<compile_context>
chip_gen: v5e
topology: v5e:2x2
jax: 0.10.0
libtpu: 0.0.40
codegen_flags: <defaults>
</compile_context>

<pallas_src>
import math

import jax
import jax.numpy as jnp
from jax.experimental import pallas as pl
from jax.experimental.pallas import tpu as pltpu


_LANES = 128
_NEG_BIG = -1e30   # finite "minus infinity" so logsumexp padding never makes NaN


# ----------------------------------------------------------------------------
# unfold / refold helpers (plain JAX, used only by the pure-JAX reference)
# ----------------------------------------------------------------------------
def unfold(tens, mode, dims, align=2):
    moved = jnp.moveaxis(tens, mode + align, align)
    return moved.reshape(tuple(tens.shape[:align]) + (dims[mode], -1))


def refold(vec, mode, dims, align=2):
    shape = (tuple(vec.shape[:align]) + (dims[mode],)
             + tuple(d for m, d in enumerate(dims) if m != mode))
    return jnp.moveaxis(vec.reshape(shape), align, mode + align)


# ----------------------------------------------------------------------------
# Fused Pallas kernel: residual + Kronecker mode products + Mahalanobis +
#                      full NLL epilogue (logsumexp over k, mean over b)
# ----------------------------------------------------------------------------
def _make_fused_kernel(b, t, k, fxy):
    def kernel(pred_ref, tgt_ref, kt_ref, ltT_ref, bias_ref, out_ref):
        # pred_ref: (b*t, k*fxy) f32  — contiguous reshape of pred (no HBM transpose)
        # tgt_ref : (b*t, fxy)   f32
        # kt_ref  : (k, fxy, fxy) bf16 — (Lf ⊗ Lx ⊗ Ly)_k  (== K_k^T for row-vec residuals)
        # ltT_ref : (k, b, t, t)  f32 — Lt^T per component, pre-broadcast over batch
        # bias_ref: (b, 128)      f32 — const + logdet_k + logw[b,k]; lanes >= k hold -1e30
        # out_ref : (1, 128)      f32 — final scalar loss broadcast across lanes
        tgt = tgt_ref[...]                                                  # (bt, fxy)
        lane = jax.lax.broadcasted_iota(jnp.int32, (1, _LANES), 1)
        mahal = jnp.zeros((b, _LANES), jnp.float32)                          # per-(b,k) sums

        for kk in range(k):                                                  # static unroll, one grid step
            # per-component residual: static 128-aligned lane slice of pred
            r = pred_ref[:, kk * fxy:(kk + 1) * fxy] - tgt                   # (bt, fxy) f32
            # single lane-dense MXU matmul (bf16 operands, f32 accumulation)
            v = jnp.dot(r.astype(jnp.bfloat16), kt_ref[kk],
                        preferred_element_type=jnp.float32)                  # (bt, fxy) f32
            # apply Lt^T along the t axis (t taps) — small batched einsum, no
            # (bt, bt) block-diagonal matrix.
            v3 = v.reshape(b, t, fxy)                                        # sublane split only
            w = jnp.einsum('bij,bjf->bif', ltT_ref[kk], v3,
                           preferred_element_type=jnp.float32)               # (b, t, fxy)
            sq = w * w
            s1 = jnp.sum(sq, axis=-1)                                        # (b, t)  one lane reduce
            m_col = jnp.sum(s1, axis=-1, keepdims=True)                      # (b, 1)
            mahal = mahal + jnp.where(lane == kk, m_col, 0.0)                # place in lane kk

        # fused epilogue: nll per (b, k) -> logsumexp over k -> mean over b
        nll = bias_ref[...] - 0.5 * mahal                                    # (b, 128); pads ~ -1e30
        m = jnp.max(nll, axis=-1, keepdims=True)                             # (b, 1)
        s = jnp.sum(jnp.exp(nll - m), axis=-1, keepdims=True)                # padded lanes contribute 0
        lse = m + jnp.log(s)                                                 # (b, 1)
        loss = -jnp.sum(lse, axis=0, keepdims=True) / float(b)               # (1, 1)
        out_ref[...] = jnp.broadcast_to(loss, (1, _LANES))                   # lane-dense store

    return kernel


def fused_nll_mgd_pallas(mu, target, Ls, logw):
    """Full MGD negative log-likelihood (scalar) — one fused Pallas kernel.

    mu: (b,t,k,f,x,y), target: (b,t,f,x,y), Ls = (Lt,Lf,Lx,Ly) each (k,d,d),
    logw: (b,k).
    """
    b, t, k, f, x, y = mu.shape
    fxy = f * x * y
    bt = b * t
    tfxy = t * fxy
    assert k <= _LANES, "n_components must fit in one lane-dense row"

    Lt, Lf, Lx, Ly = Ls

    # --- tiny parameter-side precompute (plain JAX, reads only L params / logw) ---
    # K_k = Lf^T ⊗ Lx^T ⊗ Ly^T; kernel needs K_k^T = Lf ⊗ Lx ⊗ Ly (row-major vec
    # over (f,x,y)).  Cast to bf16 (MXU operand); accumulation stays f32.
    kt = jnp.einsum('kab,kcd,kef->kacebdf', Lf, Lx, Ly)
    kt = kt.reshape(k, fxy, fxy).astype(jnp.bfloat16)
    # Lt^T per component, pre-broadcast over batch (96 floats — avoids an
    # in-kernel broadcast).
    ltT = jnp.broadcast_to(jnp.swapaxes(Lt, -1, -2)[:, None], (k, b, t, t))
    ltT = ltT.astype(jnp.float32)

    # bias[b,k] = -tfxy/2*log(2*pi) + logdet_k + logw[b,k]  (padded lanes = -1e30)
    dims = (t, f, x, y)
    logdets = [jnp.sum(jnp.log(jnp.diagonal(L, axis1=-2, axis2=-1)), axis=-1) for L in Ls]  # (k,)
    logdet = sum((tfxy / d) * ld for d, ld in zip(dims, logdets))                           # (k,)
    const = -0.5 * tfxy * math.log(2.0 * math.pi)
    bias = jnp.full((b, _LANES), _NEG_BIG, jnp.float32)
    bias = bias.at[:, :k].set(const + logdet[None, :] + logw.astype(jnp.float32))

    # --- free, contiguous reshapes (NO transpose of pred in HBM) ---
    pred2 = mu.reshape(bt, k * fxy).astype(jnp.float32)
    tgt2 = target.reshape(bt, fxy).astype(jnp.float32)

    kernel = _make_fused_kernel(b, t, k, fxy)
    out = pl.pallas_call(
        kernel,
        out_shape=jax.ShapeDtypeStruct((1, _LANES), jnp.float32),
        grid=(1,),                                           # k folded into one step
        in_specs=[
            pl.BlockSpec((bt, k * fxy), lambda i: (0, 0)),   # pred (all components)
            pl.BlockSpec((bt, fxy), lambda i: (0, 0)),       # target
            pl.BlockSpec((k, fxy, fxy), lambda i: (0, 0, 0)),  # Lf ⊗ Lx ⊗ Ly (bf16)
            pl.BlockSpec((k, b, t, t), lambda i: (0, 0, 0, 0)),  # Lt^T
            pl.BlockSpec((b, _LANES), lambda i: (0, 0)),     # logdet/logw bias
        ],
        out_specs=pl.BlockSpec((1, _LANES), lambda i: (0, 0)),
        compiler_params=pltpu.CompilerParams(dimension_semantics=("arbitrary",)),
    )(pred2, tgt2, kt, ltT, bias)
    # TODO(synk): for very large t*f*x*y on v7x, budget k*fxy^2 (bf16) against the
    # 64 MiB VMEM and set vmem_limit_bytes explicitly / re-grid over k.
    return out[0, 0]


# ----------------------------------------------------------------------------
# better_loss module (parameter setup in plain JAX)
# ----------------------------------------------------------------------------
def _build_L(param):
    """tril + (elu(diag) + 1) on the diagonal; param: (k, d, d)."""
    L = jnp.tril(param)
    d = param.shape[-1]
    diag = jax.nn.elu(jnp.diagonal(L, axis1=-2, axis2=-1)) + 1.0
    idx = jnp.arange(d)
    return L.at[:, idx, idx].set(diag)


class BetterLoss:
    def __init__(self, in_shape, rho=1.0, n_components=3, key=None, init_scale=0.1):
        self.pred_len, self.num_feature, self.xdim, self.ydim = in_shape
        self.rho = rho
        self.n_components = n_components
        if key is None:
            key = jax.random.PRNGKey(0)
        kt, kf, kx, ky = jax.random.split(key, 4)
        k = n_components
        # deterministic synthetic parameters (the torch module inits these to zeros,
        # which would make every L the identity and the test trivial)
        self._L_t = init_scale * jax.random.normal(kt, (k, self.pred_len, self.pred_len), jnp.float32)
        self._L_f = init_scale * jax.random.normal(kf, (k, self.num_feature, self.num_feature), jnp.float32)
        self._L_x = init_scale * jax.random.normal(kx, (k, self.xdim, self.xdim), jnp.float32)
        self._L_y = init_scale * jax.random.normal(ky, (k, self.ydim, self.ydim), jnp.float32)

    def get_L(self):
        # same order as covariance.get_L(): (Lt, Lf, Lx, Ly)
        return (_build_L(self._L_t), _build_L(self._L_f),
                _build_L(self._L_x), _build_L(self._L_y))

    def __call__(self, pred, target, logw):
        Ls = self.get_L()
        if self.rho == 1:
            return fused_nll_mgd_pallas(pred, target, Ls, logw)
        # TODO(synk): masked_mse path (rho != 1) omitted — its broadcasting in the
        # reference is ill-defined for 6-D pred, and rho defaults to 1.
        raise NotImplementedError


# ----------------------------------------------------------------------------
# pure-JAX reference for verification (high precision baseline)
# ----------------------------------------------------------------------------
def reference_loss(mu, target, Ls, logw):
    b, t, k, f, x, y = mu.shape
    dims = (t, f, x, y)
    R = mu - target[:, :, None]
    R = jnp.transpose(R, (0, 2, 1, 3, 4, 5))
    L_list = [jnp.broadcast_to(jnp.swapaxes(L, -1, -2)[None], (b,) + L.shape) for L in Ls]
    logdet = [jnp.sum(jnp.log(jnp.diagonal(l, axis1=-2, axis2=-1)), axis=-1) for l in L_list]
    vt = R
    for i, A in enumerate(L_list):
        temp = jnp.einsum('bnij,bnjk->bnik', A, unfold(vt, i, dims),
                          precision=jax.lax.Precision.HIGHEST)
        vt = refold(temp, i, dims)
    mahal = jnp.sum(vt ** 2, axis=(-1, -2, -3, -4))
    tfxy = t * f * x * y
    logdet_sum = sum(tfxy * ld / L_list[i].shape[-1] for i, ld in enumerate(logdet))
    nll = (-tfxy / 2.0) * math.log(2.0 * math.pi) - 0.5 * mahal + logdet_sum + logw
    return jnp.mean(-jax.nn.logsumexp(nll, axis=1))


# ----------------------------------------------------------------------------
if __name__ == "__main__":
    key = jax.random.PRNGKey(0)
    k_param, k_pred, k_tgt, k_w = jax.random.split(key, 4)

    # in_shape = (pred_len, num_feature, xdim, ydim)  ->  f*x*y = 128 (lane-dense)
    in_shape = (4, 2, 8, 8)
    n_components = 3
    batch = 2
    t, f, x, y = in_shape

    model = BetterLoss(in_shape, rho=1.0, n_components=n_components, key=k_param)

    pred = jax.random.normal(k_pred, (batch, t, n_components, f, x, y), jnp.float32)
    target = jax.random.normal(k_tgt, (batch, t, f, x, y), jnp.float32)
    logw = jax.nn.log_softmax(jax.random.normal(k_w, (batch, n_components), jnp.float32), axis=1)

    loss_fn = jax.jit(lambda p, tg, lw: model(p, tg, lw))
    loss = jax.block_until_ready(loss_fn(pred, target, logw))

    ref = jax.block_until_ready(reference_loss(pred, target, model.get_L(), logw))
    if not bool(jnp.allclose(loss, ref, rtol=2e-2, atol=1e-2)):
        raise AssertionError(f"mismatch: pallas={float(loss)} ref={float(ref)}")

    print("KERNEL_OK")
</pallas_src>

<mosaic_0001>
module attributes {stable_mosaic.version = 11 : i64} {
  func.func @kernel(%arg0: i32, %arg1: memref<8x384xf32, #tpu.memory_space<vmem>>, %arg2: memref<8x128xf32, #tpu.memory_space<vmem>>, %arg3: memref<3x128x128xbf16, #tpu.memory_space<vmem>>, %arg4: memref<3x2x4x4xf32, #tpu.memory_space<vmem>>, %arg5: memref<2x128xf32, #tpu.memory_space<vmem>>, %arg6: memref<1x128xf32, #tpu.memory_space<vmem>>) attributes {dimension_semantics = [#tpu.dimension_semantics<arbitrary>], iteration_bounds = array<i64: 1>, scalar_prefetch = 0 : i64, scratch_operands = 0 : i64, tpu.core_type = #tpu.core_type<tc>, window_params = [{pipeline_mode = #tpu.pipeline_mode<synchronous>, transform_indices = @transform_0, window_bounds = array<i64: 8, 384>}, {pipeline_mode = #tpu.pipeline_mode<synchronous>, transform_indices = @transform_1, window_bounds = array<i64: 8, 128>}, {pipeline_mode = #tpu.pipeline_mode<synchronous>, transform_indices = @transform_2, window_bounds = array<i64: 3, 128, 128>}, {pipeline_mode = #tpu.pipeline_mode<synchronous>, transform_indices = @transform_3, window_bounds = array<i64: 3, 2, 4, 4>}, {pipeline_mode = #tpu.pipeline_mode<synchronous>, transform_indices = @transform_4, window_bounds = array<i64: 2, 128>}, {pipeline_mode = #tpu.pipeline_mode<synchronous>, transform_indices = @transform_5, window_bounds = array<i64: 1, 128>}]} {
    %c0 = arith.constant 0 : index
    %c0_0 = arith.constant 0 : index
    %0 = vector.load %arg2[%c0, %c0_0] : memref<8x128xf32, #tpu.memory_space<vmem>>, vector<8x128xf32>
    %1 = tpu.iota {dimensions = array<i32: 1>} : vector<1x128xi32>
    %cst = arith.constant 0.000000e+00 : f32
    %2 = vector.broadcast %cst : f32 to vector<2x128xf32>
    %c0_1 = arith.constant 0 : index
    %c0_2 = arith.constant 0 : index
    %3 = vector.load %arg1[%c0_1, %c0_2] : memref<8x384xf32, #tpu.memory_space<vmem>>, vector<8x128xf32>
    %4 = arith.subf %3, %0 : vector<8x128xf32>
    %5 = arith.truncf %4 : vector<8x128xf32> to vector<8x128xbf16>
    %c0_3 = arith.constant 0 : index
    %c0_4 = arith.constant 0 : index
    %c0_5 = arith.constant 0 : index
    %6 = vector.load %arg3[%c0_3, %c0_4, %c0_5] : memref<3x128x128xbf16, #tpu.memory_space<vmem>>, vector<1x128x128xbf16>
    %7 = vector.shape_cast %6 : vector<1x128x128xbf16> to vector<128x128xbf16>
    %cst_6 = arith.constant dense<0.000000e+00> : vector<8x128xf32>
    %8 = tpu.matmul %5, %7, %cst_6 {dimension_numbers = #tpu.dot_dimension_numbers<[1], [0], [0], [1], [0, 0, 1, 1], [], []>} : vector<8x128xbf16>, vector<128x128xbf16>, vector<8x128xf32> -> vector<8x128xf32>
    %9 = vector.shape_cast %8 : vector<8x128xf32> to vector<2x4x128xf32>
    %c0_7 = arith.constant 0 : index
    %c0_8 = arith.constant 0 : index
    %c0_9 = arith.constant 0 : index
    %c0_10 = arith.constant 0 : index
    %10 = vector.load %arg4[%c0_7, %c0_8, %c0_9, %c0_10] : memref<3x2x4x4xf32, #tpu.memory_space<vmem>>, vector<1x2x4x4xf32>
    %11 = vector.shape_cast %10 : vector<1x2x4x4xf32> to vector<2x4x4xf32>
    "tpu.trace_start"() <{level = 10 : i32, message = "bij,bjf->bif"}> : () -> ()
    %cst_11 = arith.constant dense<0.000000e+00> : vector<2x4x128xf32>
    %12 = tpu.matmul %11, %9, %cst_11 {dimension_numbers = #tpu.dot_dimension_numbers<[2], [1], [1], [2], [0, 0, 0, 1, 1, 2], [0], [0]>} : vector<2x4x4xf32>, vector<2x4x128xf32>, vector<2x4x128xf32> -> vector<2x4x128xf32>
    "tpu.trace_stop"() : () -> ()
    %13 = arith.mulf %12, %12 : vector<2x4x128xf32>
    %cst_12 = arith.constant dense<0.000000e+00> : vector<2x4xf32>
    %14 = vector.multi_reduction <add>, %13, %cst_12 [2] : vector<2x4x128xf32> to vector<2x4xf32>
    %cst_13 = arith.constant dense<0.000000e+00> : vector<2xf32>
    %15 = vector.multi_reduction <add>, %14, %cst_13 [1] : vector<2x4xf32> to vector<2xf32>
    %16 = vector.shape_cast %15 : vector<2xf32> to vector<2x1xf32>
    %c0_i32 = arith.constant 0 : i32
    %17 = vector.broadcast %c0_i32 : i32 to vector<1x128xi32>
    %18 = arith.cmpi eq, %1, %17 : vector<1x128xi32>
    %cst_14 = arith.constant 0.000000e+00 : f32
    %19 = vector.shape_cast %18 : vector<1x128xi1> to vector<1x128xi1>
    %20 = vector.broadcast %19 : vector<1x128xi1> to vector<2x128xi1>
    %21 = vector.shape_cast %16 : vector<2x1xf32> to vector<2x1xf32>
    %22 = vector.broadcast %21 : vector<2x1xf32> to vector<2x128xf32>
    %23 = vector.broadcast %cst_14 : f32 to vector<2x128xf32>
    %24 = arith.select %20, %22, %23 : vector<2x128xi1>, vector<2x128xf32>
    %25 = arith.addf %2, %24 : vector<2x128xf32>
    %c0_15 = arith.constant 0 : index
    %c128 = arith.constant 128 : index
    %26 = vector.load %arg1[%c0_15, %c128] : memref<8x384xf32, #tpu.memory_space<vmem>>, vector<8x128xf32>
    %27 = arith.subf %26, %0 : vector<8x128xf32>
    %28 = arith.truncf %27 : vector<8x128xf32> to vector<8x128xbf16>
    %c1 = arith.constant 1 : index
    %c0_16 = arith.constant 0 : index
    %c0_17 = arith.constant 0 : index
    %29 = vector.load %arg3[%c1, %c0_16, %c0_17] : memref<3x128x128xbf16, #tpu.memory_space<vmem>>, vector<1x128x128xbf16>
    %30 = vector.shape_cast %29 : vector<1x128x128xbf16> to vector<128x128xbf16>
    %cst_18 = arith.constant dense<0.000000e+00> : vector<8x128xf32>
    %31 = tpu.matmul %28, %30, %cst_18 {dimension_numbers = #tpu.dot_dimension_numbers<[1], [0], [0], [1], [0, 0, 1, 1], [], []>} : vector<8x128xbf16>, vector<128x128xbf16>, vector<8x128xf32> -> vector<8x128xf32>
    %32 = vector.shape_cast %31 : vector<8x128xf32> to vector<2x4x128xf32>
    %c1_19 = arith.constant 1 : index
    %c0_20 = arith.constant 0 : index
    %c0_21 = arith.constant 0 : index
    %c0_22 = arith.constant 0 : index
    %33 = vector.load %arg4[%c1_19, %c0_20, %c0_21, %c0_22] : memref<3x2x4x4xf32, #tpu.memory_space<vmem>>, vector<1x2x4x4xf32>
    %34 = vector.shape_cast %33 : vector<1x2x4x4xf32> to vector<2x4x4xf32>
    "tpu.trace_start"() <{level = 10 : i32, message = "bij,bjf->bif"}> : () -> ()
    %cst_23 = arith.constant dense<0.000000e+00> : vector<2x4x128xf32>
    %35 = tpu.matmul %34, %32, %cst_23 {dimension_numbers = #tpu.dot_dimension_numbers<[2], [1], [1], [2], [0, 0, 0, 1, 1, 2], [0], [0]>} : vector<2x4x4xf32>, vector<2x4x128xf32>, vector<2x4x128xf32> -> vector<2x4x128xf32>
    "tpu.trace_stop"() : () -> ()
    %36 = arith.mulf %35, %35 : vector<2x4x128xf32>
    %cst_24 = arith.constant dense<0.000000e+00> : vector<2x4xf32>
    %37 = vector.multi_reduction <add>, %36, %cst_24 [2] : vector<2x4x128xf32> to vector<2x4xf32>
    %cst_25 = arith.constant dense<0.000000e+00> : vector<2xf32>
    %38 = vector.multi_reduction <add>, %37, %cst_25 [1] : vector<2x4xf32> to vector<2xf32>
    %39 = vector.shape_cast %38 : vector<2xf32> to vector<2x1xf32>
    %c1_i32 = arith.constant 1 : i32
    %40 = vector.broadcast %c1_i32 : i32 to vector<1x128xi32>
    %41 = arith.cmpi eq, %1, %40 : vector<1x128xi32>
    %cst_26 = arith.constant 0.000000e+00 : f32
    %42 = vector.shape_cast %41 : vector<1x128xi1> to vector<1x128xi1>
    %43 = vector.broadcast %42 : vector<1x128xi1> to vector<2x128xi1>
    %44 = vector.shape_cast %39 : vector<2x1xf32> to vector<2x1xf32>
    %45 = vector.broadcast %44 : vector<2x1xf32> to vector<2x128xf32>
    %46 = vector.broadcast %cst_26 : f32 to vector<2x128xf32>
    %47 = arith.select %43, %45, %46 : vector<2x128xi1>, vector<2x128xf32>
    %48 = arith.addf %25, %47 : vector<2x128xf32>
    %c0_27 = arith.constant 0 : index
    %c256 = arith.constant 256 : index
    %49 = vector.load %arg1[%c0_27, %c256] : memref<8x384xf32, #tpu.memory_space<vmem>>, vector<8x128xf32>
    %50 = arith.subf %49, %0 : vector<8x128xf32>
    %51 = arith.truncf %50 : vector<8x128xf32> to vector<8x128xbf16>
    %c2 = arith.constant 2 : index
    %c0_28 = arith.constant 0 : index
    %c0_29 = arith.constant 0 : index
    %52 = vector.load %arg3[%c2, %c0_28, %c0_29] : memref<3x128x128xbf16, #tpu.memory_space<vmem>>, vector<1x128x128xbf16>
    %53 = vector.shape_cast %52 : vector<1x128x128xbf16> to vector<128x128xbf16>
    %cst_30 = arith.constant dense<0.000000e+00> : vector<8x128xf32>
    %54 = tpu.matmul %51, %53, %cst_30 {dimension_numbers = #tpu.dot_dimension_numbers<[1], [0], [0], [1], [0, 0, 1, 1], [], []>} : vector<8x128xbf16>, vector<128x128xbf16>, vector<8x128xf32> -> vector<8x128xf32>
    %55 = vector.shape_cast %54 : vector<8x128xf32> to vector<2x4x128xf32>
    %c2_31 = arith.constant 2 : index
    %c0_32 = arith.constant 0 : index
    %c0_33 = arith.constant 0 : index
    %c0_34 = arith.constant 0 : index
    %56 = vector.load %arg4[%c2_31, %c0_32, %c0_33, %c0_34] : memref<3x2x4x4xf32, #tpu.memory_space<vmem>>, vector<1x2x4x4xf32>
    %57 = vector.shape_cast %56 : vector<1x2x4x4xf32> to vector<2x4x4xf32>
    "tpu.trace_start"() <{level = 10 : i32, message = "bij,bjf->bif"}> : () -> ()
    %cst_35 = arith.constant dense<0.000000e+00> : vector<2x4x128xf32>
    %58 = tpu.matmul %57, %55, %cst_35 {dimension_numbers = #tpu.dot_dimension_numbers<[2], [1], [1], [2], [0, 0, 0, 1, 1, 2], [0], [0]>} : vector<2x4x4xf32>, vector<2x4x128xf32>, vector<2x4x128xf32> -> vector<2x4x128xf32>
    "tpu.trace_stop"() : () -> ()
    %59 = arith.mulf %58, %58 : vector<2x4x128xf32>
    %cst_36 = arith.constant dense<0.000000e+00> : vector<2x4xf32>
    %60 = vector.multi_reduction <add>, %59, %cst_36 [2] : vector<2x4x128xf32> to vector<2x4xf32>
    %cst_37 = arith.constant dense<0.000000e+00> : vector<2xf32>
    %61 = vector.multi_reduction <add>, %60, %cst_37 [1] : vector<2x4xf32> to vector<2xf32>
    %62 = vector.shape_cast %61 : vector<2xf32> to vector<2x1xf32>
    %c2_i32 = arith.constant 2 : i32
    %63 = vector.broadcast %c2_i32 : i32 to vector<1x128xi32>
    %64 = arith.cmpi eq, %1, %63 : vector<1x128xi32>
    %cst_38 = arith.constant 0.000000e+00 : f32
    %65 = vector.shape_cast %64 : vector<1x128xi1> to vector<1x128xi1>
    %66 = vector.broadcast %65 : vector<1x128xi1> to vector<2x128xi1>
    %67 = vector.shape_cast %62 : vector<2x1xf32> to vector<2x1xf32>
    %68 = vector.broadcast %67 : vector<2x1xf32> to vector<2x128xf32>
    %69 = vector.broadcast %cst_38 : f32 to vector<2x128xf32>
    %70 = arith.select %66, %68, %69 : vector<2x128xi1>, vector<2x128xf32>
    %71 = arith.addf %48, %70 : vector<2x128xf32>
    %c0_39 = arith.constant 0 : index
    %c0_40 = arith.constant 0 : index
    %72 = vector.load %arg5[%c0_39, %c0_40] : memref<2x128xf32, #tpu.memory_space<vmem>>, vector<2x128xf32>
    %cst_41 = arith.constant 5.000000e-01 : f32
    %73 = vector.broadcast %cst_41 : f32 to vector<2x128xf32>
    %74 = arith.mulf %73, %71 : vector<2x128xf32>
    %75 = arith.subf %72, %74 : vector<2x128xf32>
    %cst_42 = arith.constant dense<0xFF800000> : vector<2xf32>
    %76 = vector.multi_reduction <maximumf>, %75, %cst_42 [1] : vector<2x128xf32> to vector<2xf32>
    %77 = vector.shape_cast %76 : vector<2xf32> to vector<2x1xf32>
    %78 = vector.broadcast %77 : vector<2x1xf32> to vector<2x128xf32>
    %79 = arith.subf %75, %78 : vector<2x128xf32>
    %80 = math.exp %79 : vector<2x128xf32>
    %cst_43 = arith.constant dense<0.000000e+00> : vector<2xf32>
    %81 = vector.multi_reduction <add>, %80, %cst_43 [1] : vector<2x128xf32> to vector<2xf32>
    %82 = vector.shape_cast %81 : vector<2xf32> to vector<2x1xf32>
    %83 = math.log %82 : vector<2x1xf32>
    %84 = arith.addf %77, %83 : vector<2x1xf32>
    %cst_44 = arith.constant dense<0.000000e+00> : vector<1xf32>
    %85 = vector.multi_reduction <add>, %84, %cst_44 [0] : vector<2x1xf32> to vector<1xf32>
    %86 = vector.shape_cast %85 : vector<1xf32> to vector<1x1xf32>
    %cst_45 = arith.constant 0.000000e+00 : f32
    %87 = vector.broadcast %cst_45 : f32 to vector<1x1xf32>
    %88 = arith.subf %87, %86 : vector<1x1xf32>
    %cst_46 = arith.constant 2.000000e+00 : f32
    %89 = vector.broadcast %cst_46 : f32 to vector<1x1xf32>
    %90 = arith.divf %88, %89 : vector<1x1xf32>
    %91 = vector.shape_cast %90 : vector<1x1xf32> to vector<1x1xf32>
    %92 = vector.broadcast %91 : vector<1x1xf32> to vector<1x128xf32>
    %c0_47 = arith.constant 0 : index
    %c0_48 = arith.constant 0 : index
    %93 = vector.load %arg6[%c0_47, %c0_48] : memref<1x128xf32, #tpu.memory_space<vmem>>, vector<1x128xf32>
    tpu.vector_store %arg6[%c0_47, %c0_48], %92 {strides = array<i32>} : memref<1x128xf32, #tpu.memory_space<vmem>>, vector<1x128xf32>,
    return
  }
  func.func @transform_0(%arg0: i32) -> (i32, i32) {
    %c0_i32 = arith.constant 0 : i32
    %c0_i32_0 = arith.constant 0 : i32
    %c0_i32_1 = arith.constant 0 : i32
    return %c0_i32, %c0_i32_0 : i32, i32
  }
  func.func @transform_1(%arg0: i32) -> (i32, i32) {
    %c0_i32 = arith.constant 0 : i32
    %c0_i32_0 = arith.constant 0 : i32
    %c0_i32_1 = arith.constant 0 : i32
    return %c0_i32, %c0_i32_0 : i32, i32
  }
  func.func @transform_2(%arg0: i32) -> (i32, i32, i32) {
    %c0_i32 = arith.constant 0 : i32
    %c0_i32_0 = arith.constant 0 : i32
    %c0_i32_1 = arith.constant 0 : i32
    %c0_i32_2 = arith.constant 0 : i32
    return %c0_i32, %c0_i32_0, %c0_i32_1 : i32, i32, i32
  }
  func.func @transform_3(%arg0: i32) -> (i32, i32, i32, i32) {
    %c0_i32 = arith.constant 0 : i32
    %c0_i32_0 = arith.constant 0 : i32
    %c0_i32_1 = arith.constant 0 : i32
    %c0_i32_2 = arith.constant 0 : i32
    %c0_i32_3 = arith.constant 0 : i32
    return %c0_i32, %c0_i32_0, %c0_i32_1, %c0_i32_2 : i32, i32, i32, i32
  }
  func.func @transform_4(%arg0: i32) -> (i32, i32) {
    %c0_i32 = arith.constant 0 : i32
    %c0_i32_0 = arith.constant 0 : i32
    %c0_i32_1 = arith.constant 0 : i32
    return %c0_i32, %c0_i32_0 : i32, i32
  }
  func.func @transform_5(%arg0: i32) -> (i32, i32) {
    %c0_i32 = arith.constant 0 : i32
    %c0_i32_0 = arith.constant 0 : i32
    %c0_i32_1 = arith.constant 0 : i32
    return %c0_i32, %c0_i32_0 : i32, i32
  }
}

</mosaic_0001>

<bundles_post_ra>
// kernel: _lambda_.1
= control target key start
LH: loop header
LB: loop body
LE: loop exit
PB: predicated region body
PF: predicated region fallthrough
CT: control target
= control target key end

     0   :  { %s918_s0 = inlined_call_operand.vmem [shape: f32[8,384], index: 0, kind: input, shape index: {}]   ;;  %s919_s1 = inlined_call_operand.vmem [shape: f32[8,128], index: 1, kind: input, shape index: {}]   ;;  %s920_s2 = inlined_call_operand.vmem [shape: bf16[3,128,128], index: 2, kind: input, shape index: {}]   ;;  %s921_s3 = inlined_call_operand.vmem [shape: f32[3,2,4,4], index: 3, kind: input, shape index: {}]   ;;  %s922_s4 = inlined_call_operand.vmem [shape: f32[2,128], index: 4, kind: input, shape index: {}]   ;;  %s923_s5 = inlined_call_operand.hbm [shape: f32[1,128], index: 5, kind: output, shape index: {}]  }
   0x1   :  { %v708_v0 = vld [vmem:[%s920_s2 + $0x78] sm:$0xff]  ;;  %v707_v2 = vld [vmem:[%s920_s2 + $0x70] sm:$0xff]  ;;  %v706_v4 = vld [vmem:[%s920_s2 + $0x68] sm:$0xff] }
   0x2   :  { %v700_v1 = vld [vmem:[%s920_s2 + $0x38] sm:$0xff]  ;;  %252 = vmatpush.bf16.msra.mxu3 %v708_v0  ;;  %v699_v3 = vld [vmem:[%s920_s2 + $0x30] sm:$0xff]  ;;  %v698_v5 = vld [vmem:[%s920_s2 + $0x28] sm:$0xff] }
   0x3   :  { %91 = vmatpush.bf16.msra.mxu0 %v700_v1 }
   0x6   :  { %253 = vmatpush.bf16.msra.mxu3 %v707_v2 }
   0x7   :  { %92 = vmatpush.bf16.msra.mxu0 %v699_v3 }
   0x8   :  { %10 = vsyncpa [#allocation3], 0  ;;  %v705_v6 = vld [vmem:[%s920_s2 + $0x60] sm:$0xff]  ;;  %v704_v8 = vld [vmem:[%s920_s2 + $0x58] sm:$0xff]  ;;  %vm112_vm0 = vcmask 1043456   ;;  %vm108_vm1 = vcmask 31744   ;;  %v22_v61 = vlaneseq }
   0x9   :  { %v697_v7 = vld [vmem:[%s920_s2 + $0x20] sm:$0xff]  ;;  %v696_v9 = vld [vmem:[%s920_s2 + $0x18] sm:$0xff]  ;;  %v703_v10 = vld [vmem:[%s920_s2 + $0x50] sm:$0xff]  ;;  %vm172_vm2 = vcmask 1041409   ;;  %vm175_vm3 = vcmask 25600   ;;  %vm503_vm7 = vcmask 1041408  }
   0xa   :  { %254 = vmatpush.bf16.msra.mxu3 %v706_v4  ;;  %v695_v11 = vld [vmem:[%s920_s2 + $0x10] sm:$0xff]  ;;  %v702_v12 = vld [vmem:[%s920_s2 + $0x48] sm:$0xff]  ;;  %v21_v14 = vld [vmem:[%s919_s1] sm:$0xff]  ;;  %v23_v63 = vand.u32 127, %v22_v61  ;;  %s540_s11 = sshll.u32 %s923_s5, 4  ;;  %s541_s11 = int_to_ptr.hbm [resolvable:$true] %s540_s11 }
   0xb   :  { %93 = vmatpush.bf16.msra.mxu0 %v698_v5  ;;  %v694_v13 = vld [vmem:[%s920_s2 + $0x8] sm:$0xff]  ;;  %v24_v16 = vld [vmem:[%s918_s0] sm:$0xff]  ;;  %v716_v26 = vld [vmem:[%s920_s2 + $0xb8] sm:$0xff] }
   0xc   :  { %v184_v15 = vld [vmem:[%s918_s0 + $0x8] sm:$0xff]  ;;  %v25_v18 = vsub.f32 %v24_v16, %v21_v14  ;;  %v701_v19 = vld [vmem:[%s920_s2 + $0x40] sm:$0xff]  ;;  %v715_v31 = vld [vmem:[%s920_s2 + $0xb0] sm:$0xff]  ;;  %vm337_vm4 = vcmp.eq.s32.totalorder %v23_v63, 1  ;;  %vm179_vm5 = vcmp.eq.s32.totalorder %v23_v63, 0  ;;  %vm495_vm6 = vcmp.eq.s32.totalorder %v23_v63, 2 }
   0xd   :  { %v185_v17 = vsub.f32 %v184_v15, %v21_v14  ;;  %v693_v20 = vld [vmem:[%s920_s2] sm:$0xff]  ;;  %v633_v28 = vld [vmem:[%s921_s3 + $0x8] sm:$0xf]  ;;  %v634_v35 = vld [vmem:[%s921_s3 + $0xc] sm:$0xf] }
   0xe   :  { %255 = vmatpush.bf16.msra.mxu3 %v705_v6  ;;  %v26_v22 = vpack.c.bf16 %v25_v18, %v25_v18  ;;  %v106_v23 = vld [vmem:[%s921_s3] sm:$0xf]  ;;  %v107_v30 = vld [vmem:[%s921_s3 + $0x4] sm:$0xf]  ;;  %v714_v33 = vld [vmem:[%s920_s2 + $0xa8] sm:$0xff] }
   0xf   :  { %94 = vmatpush.bf16.msra.mxu0 %v697_v7  ;;  %v186_v21 = vpack.c.bf16 %v185_v17, %v185_v17  ;;  %v713_v36 = vld [vmem:[%s920_s2 + $0xa0] sm:$0xff]  ;;  %v712_v37 = vld [vmem:[%s920_s2 + $0x98] sm:$0xff]  ;;  %v711_v38 = vld [vmem:[%s920_s2 + $0x90] sm:$0xff] }
  0x10   :  { %v710_v39 = vld [vmem:[%s920_s2 + $0x88] sm:$0xff]  ;;  %v342_v40 = vld [vmem:[%s918_s0 + $0x10] sm:$0xff]  ;;  %v709_v42 = vld [vmem:[%s920_s2 + $0x80] sm:$0xff] }
  0x11   :  { %v343_v41 = vsub.f32 %v342_v40, %v21_v14  ;;  %v687_v56 = vld [vmem:[%s921_s3 + $0x10] sm:$0xf]  ;;  %v688_v59 = vld [vmem:[%s921_s3 + $0x14] sm:$0xf]  ;;  %v751_v40 = vmov 2.0  }
  0x12   :  { %256 = vmatpush.bf16.msra.mxu3 %v704_v8 }
  0x13   :  { %95 = vmatpush.bf16.msra.mxu0 %v696_v9  ;;  %v344_v43 = vpack.c.bf16 %v343_v41, %v343_v41 }
  0x16   :  { %257 = vmatpush.bf16.msra.mxu3 %v703_v10 }
  0x17   :  { %96 = vmatpush.bf16.msra.mxu0 %v695_v11 }
  0x1a   :  { %258 = vmatpush.bf16.msra.mxu3 %v702_v12 }
  0x1b   :  { %97 = vmatpush.bf16.msra.mxu0 %v694_v13 }
  0x1e   :  { %259 = vmatpush.bf16.msra.mxu3 %v701_v19 }
  0x1f   :  { %98 = vmatpush.bf16.msra.mxu0 %v693_v20 }
  0x21   :  { %260 = vmatmul.bf16.vlgmr.msra.gmra.mxu3 %v186_v21 }
  0x22   :  { %99 = vmatmul.bf16.vlgmr.msra.gmra.mxu0 %v26_v22 }
  0x9f   :  { %v100_v24 = vpop.f32.mrf.mxu0 }
  0xa0   :  { %v105_v25 = vrot.slane %v100_v24, 4  ;;  %581 = vmatpush.msk.msra.mxu2 %vm112_vm0, %v100_v24 }
  0xa1   :  { %582 = vmatmul.msk.f32.vlgmr.msra.gmra.mxu2 %vm108_vm1, %v106_v23 }
  0xa2   :  { %583 = vmatpush.msk.msrb.mxu2 %vm112_vm0, %v105_v25 }
  0xa4   :  { %v261_v27 = vpop.f32.mrf.mxu3 }
  0xa5   :  { %v266_v29 = vrot.slane %v261_v27, 4  ;;  %635 = vmatpush.msk.msra.mxu1 %vm112_vm0, %v261_v27 }
  0xa6   :  { %636 = vmatmul.msk.f32.vlgmr.msra.gmra.mxu1 %vm108_vm1, %v633_v28 }
  0xa7   :  { %410 = vmatpush.bf16.msrb.mxu1 %v716_v26  ;;  %v102_v32 = vpop.f32.mrf.mxu0  ;;  %637 = vmatpush.msk.msra.mxu2 %vm112_vm0, %v266_v29 }
  0xa9   :  { %584 = vmatmul.msk.f32.vlgmr.msrb.gmra.mxu2 %vm108_vm1, %v107_v30 }
  0xab   :  { %411 = vmatpush.bf16.msrb.mxu1 %v715_v31  ;;  %v500_v31 = vld [vmem:[%s922_s4] sm:$0x3]  ;;  %s752_s4 = smov [#allocation2]  }
  0xac   :  { %v263_v34 = vpop.f32.mrf.mxu3  ;;  %s538_s8 = sshll.u32 %s752_s4, 4  ;;  %s539_s8 = int_to_ptr.vmem [resolvable:$true] %s538_s8 }
  0xaf   :  { %412 = vmatpush.bf16.msrb.mxu1 %v714_v33 }
  0xb1   :  { %638 = vmatmul.msk.f32.vlgmr.msra.gmra.mxu2 %vm108_vm1, %v634_v35 }
  0xb3   :  { %413 = vmatpush.bf16.msrb.mxu1 %v713_v36 }
  0xb7   :  { %414 = vmatpush.bf16.msrb.mxu1 %v712_v37 }
  0xbb   :  { %415 = vmatpush.bf16.msrb.mxu1 %v711_v38 }
  0xbf   :  { %416 = vmatpush.bf16.msrb.mxu1 %v710_v39 }
  0xc3   :  { %417 = vmatpush.bf16.msrb.mxu1 %v709_v42 }
  0xc6   :  { %418 = vmatmul.bf16.vlgmr.msrb.gmra.mxu1 %v344_v43 }
 0x123   :  { %v292_v46 = vpop.f32.mrf.mxu1 }
 0x124   :  { %v132_v44 = vpop.f32.mrf.mxu2  ;;  %v320_v47 = vmul.f32 %v292_v46, %v292_v46 }
 0x125   :  { %v160_v45 = vmul.f32 %v132_v44, %v132_v44 }
 0x126   :  { %v322_v49 = vsel %vm112_vm0, %v320_v47, 0.0 }
 0x127   :  { %v162_v48 = vsel %vm112_vm0, %v160_v45, 0.0  ;;  %323 = vadd.xlane.f32.xlu1 %v322_v49 }
 0x128   :  { %163 = vadd.xlane.f32.xlu0 %v162_v48 }
 0x12c   :  { %v157_v50 = vpop.f32.mrf.mxu2 }
 0x12d   :  { %v161_v51 = vmul.f32 %v157_v50, %v157_v50 }
 0x12f   :  { %v165_v52 = vsel %vm112_vm0, %v161_v51, 0.0 }
 0x130   :  { %166 = vadd.xlane.f32.xlu0 %v165_v52 }
 0x134   :  { %v317_v53 = vpop.f32.mrf.mxu2 }
 0x135   :  { %v321_v54 = vmul.f32 %v317_v53, %v317_v53 }
 0x137   :  { %v325_v55 = vsel %vm112_vm0, %v321_v54, 0.0 }
 0x138   :  { %326 = vadd.xlane.f32.xlu1 %v325_v55 }
 0x143   :  { %v419_v57 = vpop.f32.mrf.mxu1 }
 0x144   :  { %v424_v58 = vrot.slane %v419_v57, 4  ;;  %689 = vmatpush.msk.msrb.mxu2 %vm112_vm0, %v419_v57 }
 0x145   :  { %690 = vmatmul.msk.f32.vlgmr.msrb.gmra.mxu2 %vm108_vm1, %v687_v56 }
 0x146   :  { %691 = vmatpush.msk.msra.mxu2 %vm112_vm0, %v424_v58 }
 0x14b   :  { %v421_v60 = vpop.f32.mrf.mxu1 }
 0x14d   :  { %692 = vmatmul.msk.f32.vlgmr.msra.gmra.mxu2 %vm108_vm1, %v688_v59 }
 0x19a   :  { %v324_v0 = vpop.xlane.xlu1 %323 }
 0x19b   :  { %v164_v62 = vpop.xlane.xlu0 %163  ;;  %v330_v6 = vperm.slane %v324_v0, %v23_v63 }
 0x19c   :  { %v170_v1 = vperm.slane %v164_v62, %v23_v63 }
 0x1a3   :  { %v167_v2 = vpop.xlane.xlu0 %166 }
 0x1a4   :  { %v171_v3 = vperm.slane %v167_v2, %v23_v63 }
 0x1a6   :  { %v173_v4 = vsel %vm172_vm2, %v171_v3, %v170_v1 }
 0x1a7   :  { %v176_v5 = vsel %vm175_vm3, %v173_v4, 0.0 }
 0x1a8   :  { %177 = vadd.xlane.f32.xlu0 %v176_v5 }
 0x1ab   :  { %v327_v7 = vpop.xlane.xlu1 %326 }
 0x1ac   :  { %v331_v8 = vperm.slane %v327_v7, %v23_v63 }
 0x1ae   :  { %v332_v9 = vsel %vm172_vm2, %v331_v8, %v330_v6 }
 0x1af   :  { %v334_v10 = vsel %vm175_vm3, %v332_v9, 0.0 }
 0x1b0   :  { %335 = vadd.xlane.f32.xlu1 %v334_v10 }
 0x1c8   :  { %v450_v11 = vpop.f32.mrf.mxu2 }
 0x1c9   :  { %v478_v12 = vmul.f32 %v450_v11, %v450_v11 }
 0x1cb   :  { %v480_v13 = vsel %vm112_vm0, %v478_v12, 0.0 }
 0x1cc   :  { %481 = vadd.xlane.f32.xlu2 %v480_v13 }
 0x1d0   :  { %v475_v14 = vpop.f32.mrf.mxu2 }
 0x1d1   :  { %v479_v15 = vmul.f32 %v475_v14, %v475_v14 }
 0x1d3   :  { %v483_v16 = vsel %vm112_vm0, %v479_v15, 0.0 }
 0x1d4   :  { %484 = vadd.xlane.f32.xlu2 %v483_v16 }
 0x21b   :  { %v178_v24 = vpop.xlane.xlu0 %177 }
 0x21c   :  { %v182_v26 = vsel %vm179_vm5, %v178_v24, 0.0 }
 0x223   :  { %v336_v23 = vpop.xlane.xlu1 %335 }
 0x224   :  { %v340_v25 = vsel %vm337_vm4, %v336_v23, 0.0 }
 0x225   :  { %v341_v27 = vadd.f32 %v340_v25, %v182_v26 }
 0x23f   :  { %v482_v17 = vpop.xlane.xlu2 %481 }
 0x240   :  { %v488_v19 = vperm.slane %v482_v17, %v23_v63 }
 0x247   :  { %v485_v18 = vpop.xlane.xlu2 %484 }
 0x248   :  { %v489_v20 = vperm.slane %v485_v18, %v23_v63 }
 0x24a   :  { %v490_v21 = vsel %vm172_vm2, %v489_v20, %v488_v19 }
 0x24b   :  { %v492_v22 = vsel %vm175_vm3, %v490_v21, 0.0 }
 0x24c   :  { %493 = vadd.xlane.f32.xlu2 %v492_v22 }
 0x2bf   :  { %v494_v28 = vpop.xlane.xlu2 %493 }
 0x2c0   :  { %v498_v29 = vsel %vm495_vm6, %v494_v28, 0.0 }
 0x2c1   :  { %v499_v30 = vadd.f32 %v498_v29, %v341_v27 }
 0x2c3   :  { %v501_v32 = vmul.f32 0.5, %v499_v30 }
 0x2c5   :  { %v502_v33 = vsub.f32 %v500_v31, %v501_v32 }
 0x2c7   :  { %v504_v34 = vsel %vm503_vm7, %v502_v33, -inf }
 0x2c8   :  { %505 = vmax.xlane.f32.xlu0 %v504_v34 }
 0x33b   :  { %v506_v35 = vpop.xlane.xlu0 %505 }
 0x33c   :  { %v507_v36 = vsub.f32 %v502_v33, %v506_v35 }
 0x33e   :  { %v508_v37 = vmul.f32 1.442695, %v507_v36 }
 0x340   :  { %719 = vpow2.f32 %v508_v37 }
 0x341   :  { %721 = vrcp.f32 %v751_v40 }
 0x346   :  { %v720_v38 = vpop.eup %719 }
 0x347   :  { %v510_v39 = vsel %vm503_vm7, %v720_v38, 0.0  ;;  %v722_v42 = vpop.eup %721 }
 0x348   :  { %511 = vadd.xlane.f32.xlu1 %v510_v39  ;;  %v525_v45 = vmul.f32 2.0, %v722_v42  ;;  %vm529_vm8 = vweird.f32 %v722_v42 }
 0x34a   :  { %v526_v48 = vsub.f32 1.0, %v525_v45 }
 0x34c   :  { %v527_v51 = vmul.f32 %v722_v42, %v526_v48 }
 0x34e   :  { %v528_v54 = vadd.f32 %v722_v42, %v527_v51 }
 0x350   :  { %v530_v57 = vsel %vm529_vm8, %v722_v42, %v528_v54 }
 0x3bb   :  { %v512_v41 = vpop.xlane.xlu1 %511 }
 0x3bc   :  { %723 = vlog2.f32 %v512_v41 }
 0x3c2   :  { %v724_v43 = vpop.eup %723 }
 0x3c3   :  { %v514_v44 = vmul.f32 0.6931472, %v724_v43 }
 0x3c5   :  { %v515_v46 = vadd.f32 %v514_v44, %v506_v35 }
 0x3c7   :  { %v516_v47 = vsel %vm503_vm7, %v515_v46, 0.0 }
 0x3c8   :  { %v517_v49 = vrot.slane %v516_v47, 4 }
 0x3ca   :  { %v518_v50 = vadd.f32 %v517_v49, %v516_v47 }
 0x3cc   :  { %v519_v52 = vrot.slane %v518_v50, 2 }
 0x3ce   :  { %v520_v53 = vadd.f32 %v519_v52, %v518_v50 }
 0x3d0   :  { %v521_v55 = vrot.slane %v520_v53, 1 }
 0x3d2   :  { %v522_v56 = vadd.f32 %v521_v55, %v520_v53 }
 0x3d4   :  { %v523_v58 = vsub.f32 0.0, %v522_v56 }
 0x3d6   :  { %v531_v59 = vmul.f32 %v530_v57, %v523_v58 }
 0x3d8   :  { %532 = vst [vmem:[#allocation2] sm:$0x1] %v531_v59 }
 0x3d9   :  { %543 = dma.vmem_to_hbm [thread:$0]  %s539_s8, 16, %s541_s11, [#allocation3]  }
 0x3da   :  { %749 = dma.done.wait [#allocation3], 16  }
 0x3db   :  { %750 = vsyncadd [#allocation3], 4294967280 }
 0x3dc   :  { %548 = vsyncpa [#allocation3], 1 }

</bundles_post_ra>
